<compile_context>
chip_gen: v7x
topology: tpu7x:2x2x1
jax: 0.10.0
libtpu: 0.0.40
codegen_flags: <defaults>
</compile_context>

<pallas_src>
import functools

import jax
import jax.numpy as jnp
from jax.experimental import pallas as pl
from jax.experimental.pallas import tpu as pltpu

INPUT_DIM = 10
HIDDEN_DIM = 64
OUTPUT_DIM = 128
L2_LAMBDA = 0.001          # only used by l2_regularization_loss, not forward()
HIDDEN_PAD = 128           # hidden dim padded 64 -> 128 (exact, see prep_params)
MAX_BATCH_TILE = 2048      # rows per grid step (2048x128 f32 out tile = 1 MiB)


def _round_up(n, m):
    return ((n + m - 1) // m) * m


def _use_bf16_relu():
    """bf16 VALU exists on v6e/v7x; v5e (and older) would unpack/repack."""
    try:
        kind = jax.devices()[0].device_kind.lower()
    except Exception:
        return True
    return ("v6" in kind) or ("v7" in kind)


def _ffn_kernel(x_ref,
                w1_ref, b1_ref,
                w2_ref, b2_ref,
                w3_ref, b3_ref,
                w4_ref, b4_ref,
                w5_ref, b5_ref,
                o_ref,
                *, bf16_relu):
    # Fused hot path: 5 bf16 MXU matmuls with f32 accumulation + bias + ReLU.
    x = x_ref[...].astype(jnp.bfloat16)            # in-kernel cast (free VPU op)

    def layer(h, w_ref, b_ref):
        acc = jnp.dot(h, w_ref[...], preferred_element_type=jnp.float32) + b_ref[...]
        if bf16_relu:                               # v6e / v7x: bf16 VALU max
            return jnp.maximum(acc.astype(jnp.bfloat16), 0)
        return jnp.maximum(acc, 0.0).astype(jnp.bfloat16)   # v5e: f32 max, then pack

    h = layer(x, w1_ref, b1_ref)
    h = layer(h, w2_ref, b2_ref)
    h = layer(h, w3_ref, b3_ref)
    h = layer(h, w4_ref, b4_ref)
    out = jnp.dot(h, w5_ref[...], preferred_element_type=jnp.float32) + b5_ref[...]
    o_ref[...] = out.astype(o_ref.dtype)


def prep_params(params):
    """Zero-pad hidden dim 64->128 and cast weights to bf16 (biases stay f32).

    Call ONCE at parameter-load time and reuse the result for every forward
    call (hoisted out of the hot path per perf review).

    Exact transformation: padded hidden units see all-zero incoming weights and
    zero bias, ReLU(0)=0, and have all-zero outgoing weights, so they contribute
    nothing to the output."""
    def pad2(a, rows, cols):
        return jnp.pad(a, ((0, rows - a.shape[0]), (0, cols - a.shape[1])))

    prepped = {
        "w1": pad2(params["w1"], INPUT_DIM, HIDDEN_PAD).astype(jnp.bfloat16),
        "b1": pad2(params["b1"], 1, HIDDEN_PAD).astype(jnp.float32),
        "w5": pad2(params["w5"], HIDDEN_PAD, OUTPUT_DIM).astype(jnp.bfloat16),
        "b5": params["b5"].astype(jnp.float32),
    }
    for i in (2, 3, 4):
        prepped[f"w{i}"] = pad2(params[f"w{i}"], HIDDEN_PAD,
                                HIDDEN_PAD).astype(jnp.bfloat16)
        prepped[f"b{i}"] = pad2(params[f"b{i}"], 1, HIDDEN_PAD).astype(jnp.float32)
    return prepped


def custom_ffn_v3(x, prepped_params, out_dtype=jnp.float32):
    """x: [batch, INPUT_DIM] float32.  prepped_params: output of prep_params()."""
    batch = x.shape[0]

    # --- batch tiling ----------------------------------------------------
    # num_tiles from cdiv so padding is bounded to <8 rows per tile.
    num_tiles = pl.cdiv(batch, MAX_BATCH_TILE)
    # Ensure >= 2 balanced grid steps for larger batches so the ("parallel",)
    # axis shards across v7x's two TensorCores (near-free on 1-TC chips).
    if batch > MAX_BATCH_TILE // 2:
        num_tiles = max(num_tiles, 2)
    tile_b = _round_up(pl.cdiv(batch, num_tiles), 8)    # sublane-aligned
    padded_batch = num_tiles * tile_b
    if padded_batch != batch:
        x = jnp.pad(x, ((0, padded_batch - batch), (0, 0)))

    p = prepped_params
    args = (
        x,                                  # f32; cast to bf16 inside the kernel
        p["w1"], p["b1"],
        p["w2"], p["b2"],
        p["w3"], p["b3"],
        p["w4"], p["b4"],
        p["w5"], p["b5"],
    )

    grid = (num_tiles,)

    # x tiled along batch; weights/biases resident (same block every step).
    x_spec = pl.BlockSpec((tile_b, INPUT_DIM), lambda i: (i, 0))

    def resident_spec(shape):   # shape captured at call time -> no late binding
        return pl.BlockSpec(shape, lambda i: (0, 0))

    in_specs = [x_spec] + [resident_spec(a.shape) for a in args[1:]]
    out_spec = pl.BlockSpec((tile_b, OUTPUT_DIM), lambda i: (i, 0))

    out_itemsize = jnp.dtype(out_dtype).itemsize
    flops = 2 * padded_batch * (INPUT_DIM * HIDDEN_PAD
                                + 3 * HIDDEN_PAD * HIDDEN_PAD
                                + HIDDEN_PAD * OUTPUT_DIM)
    bytes_accessed = (sum(int(a.size) * a.dtype.itemsize for a in args)
                      + padded_batch * OUTPUT_DIM * out_itemsize)

    kernel = functools.partial(_ffn_kernel, bf16_relu=_use_bf16_relu())

    out = pl.pallas_call(
        kernel,
        out_shape=jax.ShapeDtypeStruct((padded_batch, OUTPUT_DIM), out_dtype),
        grid=grid,
        in_specs=in_specs,
        out_specs=out_spec,
        compiler_params=pltpu.CompilerParams(
            dimension_semantics=("parallel",)),
        cost_estimate=pl.CostEstimate(
            flops=flops, transcendentals=0, bytes_accessed=bytes_accessed),
    )(*args)

    return out[:batch] if padded_batch != batch else out


def l2_regularization_loss(params):
    """Pure-jnp equivalent of the module's l2_regularization_loss (tiny scalar
    reduction; not worth a kernel)."""
    return L2_LAMBDA * sum(jnp.linalg.norm(v.ravel()) for v in params.values())


def init_params(key):
    """Deterministic init matching the PyTorch module's parameter shapes.
    PyTorch Linear weight is [out, in]; we store its transpose [in, out]."""
    dims = [(INPUT_DIM, HIDDEN_DIM),
            (HIDDEN_DIM, HIDDEN_DIM),
            (HIDDEN_DIM, HIDDEN_DIM),
            (HIDDEN_DIM, HIDDEN_DIM),
            (HIDDEN_DIM, OUTPUT_DIM)]
    params = {}
    for i, (din, dout) in enumerate(dims, start=1):
        key, kw, kb = jax.random.split(key, 3)
        bound = 1.0 / (din ** 0.5)  # PyTorch Linear default uniform init range
        params[f"w{i}"] = jax.random.uniform(
            kw, (din, dout), jnp.float32, minval=-bound, maxval=bound)
        # bias kept 2D (1, dout) for clean TPU layout; broadcasts over batch.
        params[f"b{i}"] = jax.random.uniform(
            kb, (1, dout), jnp.float32, minval=-bound, maxval=bound)
    return params


def reference_ffn_bf16(x, prepped):
    """Pure-jnp reference mirroring the kernel's numerics (bf16 inputs,
    f32 accumulation) on the prepped (padded) weights."""
    h = x.astype(jnp.bfloat16)
    for i in range(1, 5):
        h = jnp.dot(h, prepped[f"w{i}"],
                    preferred_element_type=jnp.float32) + prepped[f"b{i}"]
        h = jnp.maximum(h, 0.0).astype(jnp.bfloat16)
    return jnp.dot(h, prepped["w5"],
                   preferred_element_type=jnp.float32) + prepped["b5"]


def reference_ffn_f32(x, params):
    h = x
    for i in range(1, 5):
        h = jnp.maximum(h @ params[f"w{i}"] + params[f"b{i}"], 0.0)
    return h @ params["w5"] + params["b5"]


if __name__ == "__main__":
    key = jax.random.PRNGKey(0)
    key, kx1, kx2 = jax.random.split(key, 3)
    params = init_params(key)
    prepped = prep_params(params)   # prepped once, reused for every call

    # Small-shape check (single grid step).
    batch = 8
    x = jax.random.normal(kx1, (batch, INPUT_DIM), jnp.float32)
    out = jax.block_until_ready(custom_ffn_v3(x, prepped))
    assert out.shape == (batch, OUTPUT_DIM), out.shape
    ref = reference_ffn_bf16(x, prepped)
    assert jnp.allclose(out, ref, atol=1e-2, rtol=1e-2), "mismatch vs bf16 ref"
    # Loose sanity check against the full-f32 reference (bf16 rounding only).
    ref32 = reference_ffn_f32(x, params)
    assert jnp.max(jnp.abs(out - ref32)) < 0.1, "drifted too far from f32 ref"

    # Larger, non-multiple batch: exercises multi-step grid + bounded padding
    # (1200 > MAX_BATCH_TILE//2 -> 2 grid steps, tile_b=600, 0 pad rows).
    batch2 = 1200
    x2 = jax.random.normal(kx2, (batch2, INPUT_DIM), jnp.float32)
    out2 = jax.block_until_ready(custom_ffn_v3(x2, prepped))
    assert out2.shape == (batch2, OUTPUT_DIM), out2.shape
    ref2 = reference_ffn_bf16(x2, prepped)
    assert jnp.allclose(out2, ref2, atol=1e-2, rtol=1e-2), "mismatch (tiled)"

    print("KERNEL_OK")
</pallas_src>

<mosaic_0001>
module attributes {stable_mosaic.version = 11 : i64} {
  func.func @_ffn_kernel(%arg0: i32, %arg1: memref<8x10xf32, #tpu.memory_space<vmem>>, %arg2: memref<10x128xbf16, #tpu.memory_space<vmem>>, %arg3: memref<1x128xf32, #tpu.memory_space<vmem>>, %arg4: memref<128x128xbf16, #tpu.memory_space<vmem>>, %arg5: memref<1x128xf32, #tpu.memory_space<vmem>>, %arg6: memref<128x128xbf16, #tpu.memory_space<vmem>>, %arg7: memref<1x128xf32, #tpu.memory_space<vmem>>, %arg8: memref<128x128xbf16, #tpu.memory_space<vmem>>, %arg9: memref<1x128xf32, #tpu.memory_space<vmem>>, %arg10: memref<128x128xbf16, #tpu.memory_space<vmem>>, %arg11: memref<1x128xf32, #tpu.memory_space<vmem>>, %arg12: memref<8x128xf32, #tpu.memory_space<vmem>>) attributes {dimension_semantics = [#tpu.dimension_semantics<parallel>], iteration_bounds = array<i64: 1>, scalar_prefetch = 0 : i64, scratch_operands = 0 : i64, tpu.core_type = #tpu.core_type<tc>, window_params = [{transform_indices = @transform_0, window_bounds = array<i64: 8, 10>}, {pipeline_mode = #tpu.pipeline_mode<synchronous>, transform_indices = @transform_1, window_bounds = array<i64: 10, 128>}, {pipeline_mode = #tpu.pipeline_mode<synchronous>, transform_indices = @transform_2, window_bounds = array<i64: 1, 128>}, {pipeline_mode = #tpu.pipeline_mode<synchronous>, transform_indices = @transform_3, window_bounds = array<i64: 128, 128>}, {pipeline_mode = #tpu.pipeline_mode<synchronous>, transform_indices = @transform_4, window_bounds = array<i64: 1, 128>}, {pipeline_mode = #tpu.pipeline_mode<synchronous>, transform_indices = @transform_5, window_bounds = array<i64: 128, 128>}, {pipeline_mode = #tpu.pipeline_mode<synchronous>, transform_indices = @transform_6, window_bounds = array<i64: 1, 128>}, {pipeline_mode = #tpu.pipeline_mode<synchronous>, transform_indices = @transform_7, window_bounds = array<i64: 128, 128>}, {pipeline_mode = #tpu.pipeline_mode<synchronous>, transform_indices = @transform_8, window_bounds = array<i64: 1, 128>}, {pipeline_mode = #tpu.pipeline_mode<synchronous>, transform_indices = @transform_9, window_bounds = array<i64: 128, 128>}, {pipeline_mode = #tpu.pipeline_mode<synchronous>, transform_indices = @transform_10, window_bounds = array<i64: 1, 128>}, {transform_indices = @transform_11, window_bounds = array<i64: 8, 128>}]} {
    %c0 = arith.constant 0 : index
    %c0_0 = arith.constant 0 : index
    %0 = vector.load %arg1[%c0, %c0_0] : memref<8x10xf32, #tpu.memory_space<vmem>>, vector<8x10xf32>
    %1 = arith.truncf %0 : vector<8x10xf32> to vector<8x10xbf16>
    %c0_1 = arith.constant 0 : index
    %c0_2 = arith.constant 0 : index
    %2 = vector.load %arg2[%c0_1, %c0_2] : memref<10x128xbf16, #tpu.memory_space<vmem>>, vector<10x128xbf16>
    %cst = arith.constant dense<0.000000e+00> : vector<8x128xf32>
    %3 = tpu.matmul %1, %2, %cst {dimension_numbers = #tpu.dot_dimension_numbers<[1], [0], [0], [1], [0, 0, 1, 1], [], []>} : vector<8x10xbf16>, vector<10x128xbf16>, vector<8x128xf32> -> vector<8x128xf32>
    %c0_3 = arith.constant 0 : index
    %c0_4 = arith.constant 0 : index
    %4 = vector.load %arg3[%c0_3, %c0_4] : memref<1x128xf32, #tpu.memory_space<vmem>>, vector<1x128xf32>
    %5 = vector.broadcast %4 : vector<1x128xf32> to vector<8x128xf32>
    %6 = arith.addf %3, %5 : vector<8x128xf32>
    %cst_5 = arith.constant 0.000000e+00 : f32
    %7 = vector.broadcast %cst_5 : f32 to vector<8x128xf32>
    %8 = arith.maximumf %6, %7 : vector<8x128xf32>
    %9 = arith.truncf %8 : vector<8x128xf32> to vector<8x128xbf16>
    %c0_6 = arith.constant 0 : index
    %c0_7 = arith.constant 0 : index
    %10 = vector.load %arg4[%c0_6, %c0_7] : memref<128x128xbf16, #tpu.memory_space<vmem>>, vector<128x128xbf16>
    %cst_8 = arith.constant dense<0.000000e+00> : vector<8x128xf32>
    %11 = tpu.matmul %9, %10, %cst_8 {dimension_numbers = #tpu.dot_dimension_numbers<[1], [0], [0], [1], [0, 0, 1, 1], [], []>} : vector<8x128xbf16>, vector<128x128xbf16>, vector<8x128xf32> -> vector<8x128xf32>
    %c0_9 = arith.constant 0 : index
    %c0_10 = arith.constant 0 : index
    %12 = vector.load %arg5[%c0_9, %c0_10] : memref<1x128xf32, #tpu.memory_space<vmem>>, vector<1x128xf32>
    %13 = vector.broadcast %12 : vector<1x128xf32> to vector<8x128xf32>
    %14 = arith.addf %11, %13 : vector<8x128xf32>
    %cst_11 = arith.constant 0.000000e+00 : f32
    %15 = vector.broadcast %cst_11 : f32 to vector<8x128xf32>
    %16 = arith.maximumf %14, %15 : vector<8x128xf32>
    %17 = arith.truncf %16 : vector<8x128xf32> to vector<8x128xbf16>
    %c0_12 = arith.constant 0 : index
    %c0_13 = arith.constant 0 : index
    %18 = vector.load %arg6[%c0_12, %c0_13] : memref<128x128xbf16, #tpu.memory_space<vmem>>, vector<128x128xbf16>
    %cst_14 = arith.constant dense<0.000000e+00> : vector<8x128xf32>
    %19 = tpu.matmul %17, %18, %cst_14 {dimension_numbers = #tpu.dot_dimension_numbers<[1], [0], [0], [1], [0, 0, 1, 1], [], []>} : vector<8x128xbf16>, vector<128x128xbf16>, vector<8x128xf32> -> vector<8x128xf32>
    %c0_15 = arith.constant 0 : index
    %c0_16 = arith.constant 0 : index
    %20 = vector.load %arg7[%c0_15, %c0_16] : memref<1x128xf32, #tpu.memory_space<vmem>>, vector<1x128xf32>
    %21 = vector.broadcast %20 : vector<1x128xf32> to vector<8x128xf32>
    %22 = arith.addf %19, %21 : vector<8x128xf32>
    %cst_17 = arith.constant 0.000000e+00 : f32
    %23 = vector.broadcast %cst_17 : f32 to vector<8x128xf32>
    %24 = arith.maximumf %22, %23 : vector<8x128xf32>
    %25 = arith.truncf %24 : vector<8x128xf32> to vector<8x128xbf16>
    %c0_18 = arith.constant 0 : index
    %c0_19 = arith.constant 0 : index
    %26 = vector.load %arg8[%c0_18, %c0_19] : memref<128x128xbf16, #tpu.memory_space<vmem>>, vector<128x128xbf16>
    %cst_20 = arith.constant dense<0.000000e+00> : vector<8x128xf32>
    %27 = tpu.matmul %25, %26, %cst_20 {dimension_numbers = #tpu.dot_dimension_numbers<[1], [0], [0], [1], [0, 0, 1, 1], [], []>} : vector<8x128xbf16>, vector<128x128xbf16>, vector<8x128xf32> -> vector<8x128xf32>
    %c0_21 = arith.constant 0 : index
    %c0_22 = arith.constant 0 : index
    %28 = vector.load %arg9[%c0_21, %c0_22] : memref<1x128xf32, #tpu.memory_space<vmem>>, vector<1x128xf32>
    %29 = vector.broadcast %28 : vector<1x128xf32> to vector<8x128xf32>
    %30 = arith.addf %27, %29 : vector<8x128xf32>
    %cst_23 = arith.constant 0.000000e+00 : f32
    %31 = vector.broadcast %cst_23 : f32 to vector<8x128xf32>
    %32 = arith.maximumf %30, %31 : vector<8x128xf32>
    %33 = arith.truncf %32 : vector<8x128xf32> to vector<8x128xbf16>
    %c0_24 = arith.constant 0 : index
    %c0_25 = arith.constant 0 : index
    %34 = vector.load %arg10[%c0_24, %c0_25] : memref<128x128xbf16, #tpu.memory_space<vmem>>, vector<128x128xbf16>
    %cst_26 = arith.constant dense<0.000000e+00> : vector<8x128xf32>
    %35 = tpu.matmul %33, %34, %cst_26 {dimension_numbers = #tpu.dot_dimension_numbers<[1], [0], [0], [1], [0, 0, 1, 1], [], []>} : vector<8x128xbf16>, vector<128x128xbf16>, vector<8x128xf32> -> vector<8x128xf32>
    %c0_27 = arith.constant 0 : index
    %c0_28 = arith.constant 0 : index
    %36 = vector.load %arg11[%c0_27, %c0_28] : memref<1x128xf32, #tpu.memory_space<vmem>>, vector<1x128xf32>
    %37 = vector.broadcast %36 : vector<1x128xf32> to vector<8x128xf32>
    %38 = arith.addf %35, %37 : vector<8x128xf32>
    %c0_29 = arith.constant 0 : index
    %c0_30 = arith.constant 0 : index
    %39 = vector.load %arg12[%c0_29, %c0_30] : memref<8x128xf32, #tpu.memory_space<vmem>>, vector<8x128xf32>
    tpu.vector_store %arg12[%c0_29, %c0_30], %38 {strides = array<i32>} : memref<8x128xf32, #tpu.memory_space<vmem>>, vector<8x128xf32>,
    return
  }
  func.func @transform_0(%arg0: i32) -> (i32, i32) {
    %c0_i32 = arith.constant 0 : i32
    %c0_i32_0 = arith.constant 0 : i32
    return %arg0, %c0_i32 : i32, i32
  }
  func.func @transform_1(%arg0: i32) -> (i32, i32) {
    %c0_i32 = arith.constant 0 : i32
    %c0_i32_0 = arith.constant 0 : i32
    %c0_i32_1 = arith.constant 0 : i32
    return %c0_i32, %c0_i32_0 : i32, i32
  }
  func.func @transform_2(%arg0: i32) -> (i32, i32) {
    %c0_i32 = arith.constant 0 : i32
    %c0_i32_0 = arith.constant 0 : i32
    %c0_i32_1 = arith.constant 0 : i32
    return %c0_i32, %c0_i32_0 : i32, i32
  }
  func.func @transform_3(%arg0: i32) -> (i32, i32) {
    %c0_i32 = arith.constant 0 : i32
    %c0_i32_0 = arith.constant 0 : i32
    %c0_i32_1 = arith.constant 0 : i32
    return %c0_i32, %c0_i32_0 : i32, i32
  }
  func.func @transform_4(%arg0: i32) -> (i32, i32) {
    %c0_i32 = arith.constant 0 : i32
    %c0_i32_0 = arith.constant 0 : i32
    %c0_i32_1 = arith.constant 0 : i32
    return %c0_i32, %c0_i32_0 : i32, i32
  }
  func.func @transform_5(%arg0: i32) -> (i32, i32) {
    %c0_i32 = arith.constant 0 : i32
    %c0_i32_0 = arith.constant 0 : i32
    %c0_i32_1 = arith.constant 0 : i32
    return %c0_i32, %c0_i32_0 : i32, i32
  }
  func.func @transform_6(%arg0: i32) -> (i32, i32) {
    %c0_i32 = arith.constant 0 : i32
    %c0_i32_0 = arith.constant 0 : i32
    %c0_i32_1 = arith.constant 0 : i32
    return %c0_i32, %c0_i32_0 : i32, i32
  }
  func.func @transform_7(%arg0: i32) -> (i32, i32) {
    %c0_i32 = arith.constant 0 : i32
    %c0_i32_0 = arith.constant 0 : i32
    %c0_i32_1 = arith.constant 0 : i32
    return %c0_i32, %c0_i32_0 : i32, i32
  }
  func.func @transform_8(%arg0: i32) -> (i32, i32) {
    %c0_i32 = arith.constant 0 : i32
    %c0_i32_0 = arith.constant 0 : i32
    %c0_i32_1 = arith.constant 0 : i32
    return %c0_i32, %c0_i32_0 : i32, i32
  }
  func.func @transform_9(%arg0: i32) -> (i32, i32) {
    %c0_i32 = arith.constant 0 : i32
    %c0_i32_0 = arith.constant 0 : i32
    %c0_i32_1 = arith.constant 0 : i32
    return %c0_i32, %c0_i32_0 : i32, i32
  }
  func.func @transform_10(%arg0: i32) -> (i32, i32) {
    %c0_i32 = arith.constant 0 : i32
    %c0_i32_0 = arith.constant 0 : i32
    %c0_i32_1 = arith.constant 0 : i32
    return %c0_i32, %c0_i32_0 : i32, i32
  }
  func.func @transform_11(%arg0: i32) -> (i32, i32) {
    %c0_i32 = arith.constant 0 : i32
    %c0_i32_0 = arith.constant 0 : i32
    return %arg0, %c0_i32 : i32, i32
  }
}

</mosaic_0001>

<bundles_post_ra>
// kernel: tpu_custom_call.1
= control target key start
LH: loop header
LB: loop body
LE: loop exit
PB: predicated region body
PF: predicated region fallthrough
CT: control target
= control target key end

     0   :  { %16 = vsyncpa [#allocation3], 0  ;;  %s1254_s0 = inlined_call_operand.hbm [shape: f32[8,10], index: 0, kind: input, shape index: {}]   ;;  %s1255_s1 = inlined_call_operand.hbm [shape: bf16[10,128], index: 1, kind: input, shape index: {}]   ;;  %s1256_s2 = inlined_call_operand.vmem [shape: f32[1,128], index: 2, kind: input, shape index: {}]   ;;  %s1257_s3 = inlined_call_operand.hbm [shape: bf16[128,128], index: 3, kind: input, shape index: {}]   ;;  %s1258_s4 = inlined_call_operand.vmem [shape: f32[1,128], index: 4, kind: input, shape index: {}]   ;;  %s1259_s5 = inlined_call_operand.hbm [shape: bf16[128,128], index: 5, kind: input, shape index: {}]   ;;  %s1260_s6 = inlined_call_operand.vmem [shape: f32[1,128], index: 6, kind: input, shape index: {}]   ;;  %s1261_s7 = inlined_call_operand.hbm [shape: bf16[128,128], index: 7, kind: input, shape index: {}]   ;;  %s1262_s8 = inlined_call_operand.vmem [shape: f32[1,128], index: 8, kind: input, shape index: {}]   ;;  %s1263_s9 = inlined_call_operand.hbm [shape: bf16[128,128], index: 9, kind: input, shape index: {}]   ;;  %s1264_s10 = inlined_call_operand.vmem [shape: f32[1,128], index: 10, kind: input, shape index: {}]   ;;  %s1265_s11 = inlined_call_operand.hbm [shape: f32[8,128], index: 11, kind: output, shape index: {}]  }
   0x1   :  { %17 = vsyncpa [#allocation6], 0 }
   0x2   :  { %18 = vsyncpa [#allocation9], 0 }
   0x3   :  { %19 = vsyncpa [#allocation12], 0 }
   0x4   :  { %20 = vsyncpa [#allocation4], 0  ;;  %s1026_s17 = smov [#allocation5]   ;;  %s862_s21 = scalar_lea.hbm %s1255_s1, 128 }
   0x5   :  { %s36_s18 = sshll.u32 %s1026_s17, 4  ;;  %p863_p0 = scmp.ne.s32.totalorder %s1255_s1, %s862_s21  ;;  %s37_s18 = int_to_ptr.vmem [resolvable:$true] %s36_s18 }
   0x6   :  { %p866_p1 = scmp.lt.u32.totalorder %s862_s21, %s1255_s1 }
   0x8   :  { %p868_p2 = pnand %p866_p1, %p863_p0 }
   0xa   :  { %871 = shalt.err (!%p868_p2)
}
   0xb   :  { %s872_s26 = scalar_lea.vmem %s37_s18, 128  ;;  %p877_p4 = scmp.lt.s32.totalorder %s37_s18, %s37_s18 }
   0xc   :  { %p873_p3 = scmp.ne.s32.totalorder %s37_s18, %s872_s26  ;;  %p878_p5 = scmp.lt.s32.totalorder %s872_s26, %s872_s26 }
   0xe   :  { %p879_p6 = por %p878_p5, %p877_p4 }
  0x10   :  { %p880_p7 = pnand %p879_p6, %p873_p3 }
  0x12   :  { %883 = shalt.err (!%p880_p7)
}
  0x13   :  { %s1027_s27 = smov 64   ;;  %s1028_s28 = smov 4  }
  0x14   :  { %42 = dma.hbm_to_vmem [thread:$0]  %s1255_s1, 128, %s37_s18, [#allocation6], %s1027_s27, %s1027_s27, %s1028_s28  }
  0x15   :  { %s1029_s12 = smov [#allocation8]   ;;  %s1030_s14 = smov [#allocation2]  }
  0x16   :  { %s64_s13 = sshll.u32 %s1029_s12, 4  ;;  %s27_s15 = sshll.u32 %s1030_s14, 4  ;;  %s65_s13 = int_to_ptr.vmem [resolvable:$true] %s64_s13  ;;  %s28_s15 = int_to_ptr.vmem [resolvable:$true] %s27_s15 }
  0x17   :  { %s884_s19 = scalar_lea.hbm %s1259_s5, 1024 }
  0x18   :  { %p885_p8 = scmp.ne.s32.totalorder %s1259_s5, %s884_s19  ;;  %p888_p9 = scmp.lt.u32.totalorder %s884_s19, %s1259_s5 }
  0x1a   :  { %p890_p10 = pnand %p888_p9, %p885_p8 }
  0x1c   :  { %893 = shalt.err (!%p890_p10)
}
  0x1d   :  { %s894_s1 = scalar_lea.vmem %s65_s13, 1024  ;;  %p899_p12 = scmp.lt.s32.totalorder %s65_s13, %s65_s13 }
  0x1e   :  { %p895_p11 = scmp.ne.s32.totalorder %s65_s13, %s894_s1  ;;  %p900_p13 = scmp.lt.s32.totalorder %s894_s1, %s894_s1 }
  0x20   :  { %p901_p0 = por %p900_p13, %p899_p12 }
  0x22   :  { %p902_p1 = pnand %p901_p0, %p895_p11 }
  0x24   :  { %905 = shalt.err (!%p902_p1)
}
  0x25   :  { %70 = dma.hbm_to_vmem [thread:$0]  %s1259_s5, 1024, %s65_s13, [#allocation9], %s1027_s27, %s1027_s27, %s1028_s28  }
  0x26   :  { %s906_s29 = scalar_lea.hbm %s1254_s0, 128 }
  0x27   :  { %p907_p2 = scmp.ne.s32.totalorder %s1254_s0, %s906_s29  ;;  %p910_p3 = scmp.lt.u32.totalorder %s906_s29, %s1254_s0 }
  0x29   :  { %p912_p4 = pnand %p910_p3, %p907_p2 }
  0x2b   :  { %915 = shalt.err (!%p912_p4)
}
  0x2c   :  { %s916_s17 = scalar_lea.vmem %s28_s15, 128  ;;  %p921_p6 = scmp.lt.s32.totalorder %s28_s15, %s28_s15 }
  0x2d   :  { %p917_p5 = scmp.ne.s32.totalorder %s28_s15, %s916_s17  ;;  %p922_p7 = scmp.lt.s32.totalorder %s916_s17, %s916_s17 }
  0x2f   :  { %p923_p8 = por %p922_p7, %p921_p6 }
  0x31   :  { %p924_p9 = pnand %p923_p8, %p917_p5 }
  0x33   :  { %927 = shalt.err (!%p924_p9)
}
  0x34   :  { %30 = dma.hbm_to_vmem [thread:$0]  %s1254_s0, 128, %s28_s15, [#allocation3]  }
  0x35   :  { %s1031_s19 = smov [#allocation7]   ;;  %s1032_s21 = smov [#allocation10]  }
  0x36   :  { %s50_s20 = sshll.u32 %s1031_s19, 4  ;;  %s78_s22 = sshll.u32 %s1032_s21, 4  ;;  %s51_s20 = int_to_ptr.vmem [resolvable:$true] %s50_s20  ;;  %s79_s22 = int_to_ptr.vmem [resolvable:$true] %s78_s22 }
  0x37   :  { %s928_s18 = scalar_lea.hbm %s1257_s3, 1024 }
  0x38   :  { %p929_p10 = scmp.ne.s32.totalorder %s1257_s3, %s928_s18  ;;  %p932_p11 = scmp.lt.u32.totalorder %s928_s18, %s1257_s3 }
  0x3a   :  { %p934_p12 = pnand %p932_p11, %p929_p10 }
  0x3c   :  { %937 = shalt.err (!%p934_p12)
}
  0x3d   :  { %s938_s0 = scalar_lea.vmem %s51_s20, 1024  ;;  %p943_p0 = scmp.lt.s32.totalorder %s51_s20, %s51_s20 }
  0x3e   :  { %p939_p13 = scmp.ne.s32.totalorder %s51_s20, %s938_s0  ;;  %p944_p1 = scmp.lt.s32.totalorder %s938_s0, %s938_s0 }
  0x40   :  { %p945_p2 = por %p944_p1, %p943_p0 }
  0x42   :  { %p946_p3 = pnand %p945_p2, %p939_p13 }
  0x44   :  { %949 = shalt.err (!%p946_p3)
}
  0x45   :  { %56 = dma.hbm_to_vmem [thread:$0]  %s1257_s3, 1024, %s51_s20, [#allocation6], %s1027_s27, %s1027_s27, %s1028_s28  }
  0x46   :  { %s950_s16 = scalar_lea.hbm %s1261_s7, 1024 }
  0x47   :  { %p951_p4 = scmp.ne.s32.totalorder %s1261_s7, %s950_s16  ;;  %p954_p5 = scmp.lt.u32.totalorder %s950_s16, %s1261_s7 }
  0x49   :  { %p956_p6 = pnand %p954_p5, %p951_p4 }
  0x4b   :  { %959 = shalt.err (!%p956_p6)
}
  0x4c   :  { %s960_s21 = scalar_lea.vmem %s79_s22, 1024  ;;  %p965_p8 = scmp.lt.s32.totalorder %s79_s22, %s79_s22 }
  0x4d   :  { %p961_p7 = scmp.ne.s32.totalorder %s79_s22, %s960_s21  ;;  %p966_p9 = scmp.lt.s32.totalorder %s960_s21, %s960_s21 }
  0x4f   :  { %p967_p10 = por %p966_p9, %p965_p8 }
  0x51   :  { %p968_p11 = pnand %p967_p10, %p961_p7 }
  0x53   :  { %971 = shalt.err (!%p968_p11)
}
  0x54   :  { %84 = dma.hbm_to_vmem [thread:$0]  %s1261_s7, 1024, %s79_s22, [#allocation9], %s1027_s27, %s1027_s27, %s1028_s28  }
  0x55   :  { %s1033_s23 = smov [#allocation11]   ;;  %s972_s25 = scalar_lea.hbm %s1263_s9, 1024 }
  0x56   :  { %s92_s1 = sshll.u32 %s1033_s23, 4  ;;  %p973_p12 = scmp.ne.s32.totalorder %s1263_s9, %s972_s25  ;;  %s93_s1 = int_to_ptr.vmem [resolvable:$true] %s92_s1 }
  0x57   :  { %p976_p13 = scmp.lt.u32.totalorder %s972_s25, %s1263_s9 }
  0x59   :  { %p978_p0 = pnand %p976_p13, %p973_p12 }
  0x5b   :  { %981 = shalt.err (!%p978_p0)
}
  0x5c   :  { %s982_s30 = scalar_lea.vmem %s93_s1, 1024  ;;  %p987_p2 = scmp.lt.s32.totalorder %s93_s1, %s93_s1 }
  0x5d   :  { %p983_p1 = scmp.ne.s32.totalorder %s93_s1, %s982_s30  ;;  %p988_p3 = scmp.lt.s32.totalorder %s982_s30, %s982_s30 }
  0x5f   :  { %p989_p4 = por %p988_p3, %p987_p2 }
  0x61   :  { %p990_p5 = pnand %p989_p4, %p983_p1 }
  0x63   :  { %993 = shalt.err (!%p990_p5)
}
  0x64   :  { %98 = dma.hbm_to_vmem [thread:$0]  %s1263_s9, 1024, %s93_s1, [#allocation12], %s1027_s27, %s1027_s27, %s1028_s28  }
  0x65   :  { %1016 = dma.done.wait [#allocation3], 128  }
  0x66   :  { %1017 = vsyncadd [#allocation3], 4294967168 }
  0x67   :  { %1018 = dma.done.wait [#allocation6], 1152  }
  0x68   :  { %1019 = vsyncadd [#allocation6], 4294966144 }
  0x69   :  { %1020 = dma.done.wait [#allocation9], 2048  }
  0x6a   :  { %1021 = vsyncadd [#allocation9], 4294965248 }
  0x6b   :  { %1022 = dma.done.wait [#allocation12], 1024  }
  0x6c   :  { %1023 = vsyncadd [#allocation12], 4294966272  ;;  %v1034_v0 = vmov 0.0   ;;  %vm1035_vm0 = vmmov 0   ;;  %vm140_vm1 = vcmask 1044480   ;;  %v120_v2 = vld [vmem:[#allocation2] sm:$0xff] }
  0x6d   :  { %732 = vmatprep.subr.bf16.mxu0 %v1034_v0  ;;  %734 = vmatprep.mubr.msk.bf16.mxu0 %vm1035_vm0, %v1034_v0  ;;  %v829_v1 = vld [vmem:[#allocation5] sm:$0x1f]   ;;  %v121_v4 = vpack.c.bf16 %v120_v2, %v120_v2  ;;  %v830_v5 = vld [vmem:[#allocation7] sm:$0xff]   ;;  %vm136_vm2 = vcmask 80896   ;;  %v831_v6 = vld [vmem:[#allocation7 + $0x8] sm:$0xff]   ;;  %s1036_s5 = smov [#allocation13]  }
  0x6e   :  { %738 = vmatprep.subr.bf16.mxu1 %v1034_v0  ;;  %754 = vmatprep.mubr.msk.bf16.mxu1 %vm1035_vm0, %v1034_v0  ;;  %v142_v3 = vsel %vm140_vm1, %v829_v1, 0  ;;  %v832_v7 = vld [vmem:[#allocation7 + $0x10] sm:$0xff]   ;;  %v833_v8 = vld [vmem:[#allocation7 + $0x18] sm:$0xff]   ;;  %v834_v9 = vld [vmem:[#allocation7 + $0x20] sm:$0xff]   ;;  %s643_s13 = sshll.u32 %s1036_s5, 4  ;;  %s644_s13 = int_to_ptr.vmem [resolvable:$true] %s643_s13 }
  0x6f   :  { %733 = vmatpush3.bf16.msra.mxu0 %v142_v3  ;;  %739 = vmatpush3.bf16.msra.mxu1 %v830_v5  ;;  %v835_v10 = vld [vmem:[#allocation7 + $0x28] sm:$0xff]   ;;  %v836_v11 = vld [vmem:[#allocation7 + $0x30] sm:$0xff]   ;;  %v837_v12 = vld [vmem:[#allocation7 + $0x38] sm:$0xff]   ;;  %p999_p7 = scmp.lt.s32.totalorder %s644_s13, %s644_s13 }
  0x70   :  { %758 = vmatprep.subr.bf16.mxu0 %v1034_v0  ;;  %740 = vmatprep.subr.bf16.mxu1 %v1034_v0  ;;  %v838_v13 = vld [vmem:[#allocation8] sm:$0xff]   ;;  %v839_v14 = vld [vmem:[#allocation8 + $0x8] sm:$0xff]   ;;  %v840_v15 = vld [vmem:[#allocation8 + $0x10] sm:$0xff]  }
  0x71   :  { %v841_v16 = vld [vmem:[#allocation8 + $0x18] sm:$0xff]   ;;  %v842_v17 = vld [vmem:[#allocation8 + $0x20] sm:$0xff]   ;;  %v843_v18 = vld [vmem:[#allocation8 + $0x28] sm:$0xff]  }
  0x72   :  { %735 = vmatmul.mubr.msk.bf16.vlgmr.msra.gmra.mrb[0].mxu0 %vm136_vm2, %v121_v4  ;;  %v655_v19 = vld [vmem:[%s1256_s2] ss:$0 sm:$0xff]  ;;  %v845_v28 = vld [vmem:[#allocation8 + $0x38] sm:$0xff]   ;;  %v846_v29 = vld [vmem:[#allocation10] sm:$0xff]  }
  0x73   :  { %774 = vmatprep.mubr.msk.bf16.mxu0 %vm1035_vm0, %v1034_v0  ;;  %741 = vmatpush3.bf16.msra.mxu1 %v831_v6  ;;  %v844_v27 = vld [vmem:[#allocation8 + $0x30] sm:$0xff]   ;;  %v847_v30 = vld [vmem:[#allocation10 + $0x8] sm:$0xff]   ;;  %v849_v32 = vld [vmem:[#allocation10 + $0x18] sm:$0xff]  }
  0x74   :  { %742 = vmatprep.subr.bf16.mxu1 %v1034_v0  ;;  %759 = vmatpush3.bf16.msra.mxu0 %v838_v13  ;;  %v848_v31 = vld [vmem:[#allocation10 + $0x10] sm:$0xff]   ;;  %v850_v33 = vld [vmem:[#allocation10 + $0x20] sm:$0xff]   ;;  %v851_v34 = vld [vmem:[#allocation10 + $0x28] sm:$0xff]  }
  0x75   :  { %760 = vmatprep.subr.bf16.mxu0 %v1034_v0  ;;  %v658_v35 = vld [vmem:[%s1258_s4] ss:$0 sm:$0xff]  ;;  %v853_v44 = vld [vmem:[#allocation10 + $0x38] sm:$0xff]   ;;  %v854_v45 = vld [vmem:[#allocation11] sm:$0xff]  }
  0x76   :  { %v852_v43 = vld [vmem:[#allocation10 + $0x30] sm:$0xff]   ;;  %v855_v46 = vld [vmem:[#allocation11 + $0x8] sm:$0xff]   ;;  %v857_v48 = vld [vmem:[#allocation11 + $0x18] sm:$0xff]  }
  0x77   :  { %743 = vmatpush3.bf16.msra.mxu1 %v832_v7  ;;  %v856_v47 = vld [vmem:[#allocation11 + $0x10] sm:$0xff]   ;;  %v858_v49 = vld [vmem:[#allocation11 + $0x20] sm:$0xff]   ;;  %v859_v50 = vld [vmem:[#allocation11 + $0x28] sm:$0xff]  }
  0x78   :  { %744 = vmatprep.subr.bf16.mxu1 %v1034_v0  ;;  %761 = vmatpush3.bf16.msra.mxu0 %v839_v14  ;;  %v667_v51 = vld [vmem:[%s1260_s6] ss:$0 sm:$0xff]  ;;  %v861_v60 = vld [vmem:[#allocation11 + $0x38] sm:$0xff]  }
  0x79   :  { %762 = vmatprep.subr.bf16.mxu0 %v1034_v0  ;;  %v860_v59 = vld [vmem:[#allocation11 + $0x30] sm:$0xff]  }
  0x7a   :  { %v676_v61 = vld [vmem:[%s1262_s8] ss:$0 sm:$0xff]  ;;  %s994_s8 = scalar_lea.vmem %s644_s13, 128 }
  0x7b   :  { %745 = vmatpush3.bf16.msra.mxu1 %v833_v8  ;;  %v685_v6 = vld [vmem:[%s1264_s10] ss:$0 sm:$0xff]  ;;  %p995_p6 = scmp.ne.s32.totalorder %s644_s13, %s994_s8  ;;  %p1000_p8 = scmp.lt.s32.totalorder %s994_s8, %s994_s8 }
  0x7c   :  { %746 = vmatprep.subr.bf16.mxu1 %v1034_v0  ;;  %763 = vmatpush3.bf16.msra.mxu0 %v840_v15 }
  0x7d   :  { %764 = vmatprep.subr.bf16.mxu0 %v1034_v0  ;;  %p1001_p9 = por %p1000_p8, %p999_p7 }
  0x7f   :  { %747 = vmatpush3.bf16.msra.mxu1 %v834_v9  ;;  %p1002_p10 = pnand %p1001_p9, %p995_p6 }
  0x80   :  { %748 = vmatprep.subr.bf16.mxu1 %v1034_v0  ;;  %765 = vmatpush3.bf16.msra.mxu0 %v841_v16 }
  0x81   :  { %766 = vmatprep.subr.bf16.mxu0 %v1034_v0 }
  0x83   :  { %749 = vmatpush3.bf16.msra.mxu1 %v835_v10 }
  0x84   :  { %750 = vmatprep.subr.bf16.mxu1 %v1034_v0  ;;  %767 = vmatpush3.bf16.msra.mxu0 %v842_v17 }
  0x85   :  { %768 = vmatprep.subr.bf16.mxu0 %v1034_v0 }
  0x87   :  { %751 = vmatpush3.bf16.msra.mxu1 %v836_v11 }
  0x88   :  { %752 = vmatprep.subr.bf16.mxu1 %v1034_v0  ;;  %769 = vmatpush3.bf16.msra.mxu0 %v843_v18 }
  0x89   :  { %770 = vmatprep.subr.bf16.mxu0 %v1034_v0 }
  0x8b   :  { %753 = vmatpush3.bf16.msra.mxu1 %v837_v12 }
  0x8c   :  { %778 = vmatprep.subr.bf16.mxu1 %v1034_v0  ;;  %771 = vmatpush3.bf16.msra.mxu0 %v844_v27 }
  0x8d   :  { %772 = vmatprep.subr.bf16.mxu0 %v1034_v0 }
  0x90   :  { %773 = vmatpush3.bf16.msra.mxu0 %v845_v28 }
  0x91   :  { %798 = vmatprep.subr.bf16.mxu0 %v1034_v0 }
 0x145   :  { %v178_v20 = vpop.f32.mrb[0].mxu0 }
 0x146   :  { %v179_v21 = vadd.f32 %v655_v19, %v178_v20  ;;  %v736_v22 = vpop.f32.mrb[1].mxu0 }
 0x147   :  { %v181_v23 = vpop.f32.mrb[2].mxu0 }
 0x148   :  { %v184_v24 = vmax.f32 %v179_v21, 0.0  ;;  %v737_v25 = vpop.f32.mrb[3].mxu0 }
 0x14a   :  { %v185_v26 = vpack.c.bf16 %v184_v24, %v184_v24 }
 0x14c   :  { %755 = vmatmul.mubr.bf16.vlgmr.msra.gmra.mrb[0].mxu1 %v185_v26 }
 0x14d   :  { %794 = vmatprep.mubr.msk.bf16.mxu1 %vm1035_vm0, %v1034_v0  ;;  %779 = vmatpush3.bf16.msra.mxu1 %v846_v29 }
 0x14e   :  { %780 = vmatprep.subr.bf16.mxu1 %v1034_v0 }
 0x151   :  { %781 = vmatpush3.bf16.msra.mxu1 %v847_v30 }
 0x152   :  { %782 = vmatprep.subr.bf16.mxu1 %v1034_v0 }
 0x155   :  { %783 = vmatpush3.bf16.msra.mxu1 %v848_v31 }
 0x156   :  { %784 = vmatprep.subr.bf16.mxu1 %v1034_v0 }
 0x159   :  { %785 = vmatpush3.bf16.msra.mxu1 %v849_v32 }
 0x15a   :  { %786 = vmatprep.subr.bf16.mxu1 %v1034_v0 }
 0x15d   :  { %787 = vmatpush3.bf16.msra.mxu1 %v850_v33 }
 0x15e   :  { %788 = vmatprep.subr.bf16.mxu1 %v1034_v0 }
 0x161   :  { %789 = vmatpush3.bf16.msra.mxu1 %v851_v34 }
 0x162   :  { %790 = vmatprep.subr.bf16.mxu1 %v1034_v0 }
 0x165   :  { %791 = vmatpush3.bf16.msra.mxu1 %v852_v43 }
 0x166   :  { %792 = vmatprep.subr.bf16.mxu1 %v1034_v0 }
 0x169   :  { %793 = vmatpush3.bf16.msra.mxu1 %v853_v44 }
 0x21f   :  { %v291_v36 = vpop.f32.mrb[0].mxu1 }
 0x220   :  { %v292_v37 = vadd.f32 %v658_v35, %v291_v36  ;;  %v756_v38 = vpop.f32.mrb[1].mxu1 }
 0x221   :  { %v294_v39 = vpop.f32.mrb[2].mxu1 }
 0x222   :  { %v297_v40 = vmax.f32 %v292_v37, 0.0  ;;  %v757_v41 = vpop.f32.mrb[3].mxu1 }
 0x224   :  { %v298_v42 = vpack.c.bf16 %v297_v40, %v297_v40 }
 0x226   :  { %775 = vmatmul.mubr.bf16.vlgmr.msra.gmra.mrb[4].mxu0 %v298_v42 }
 0x227   :  { %814 = vmatprep.mubr.msk.bf16.mxu0 %vm1035_vm0, %v1034_v0  ;;  %799 = vmatpush3.bf16.msra.mxu0 %v854_v45 }
 0x228   :  { %800 = vmatprep.subr.bf16.mxu0 %v1034_v0 }
 0x22b   :  { %801 = vmatpush3.bf16.msra.mxu0 %v855_v46 }
 0x22c   :  { %802 = vmatprep.subr.bf16.mxu0 %v1034_v0 }
 0x22f   :  { %803 = vmatpush3.bf16.msra.mxu0 %v856_v47 }
 0x230   :  { %804 = vmatprep.subr.bf16.mxu0 %v1034_v0 }
 0x233   :  { %805 = vmatpush3.bf16.msra.mxu0 %v857_v48 }
 0x234   :  { %806 = vmatprep.subr.bf16.mxu0 %v1034_v0 }
 0x237   :  { %807 = vmatpush3.bf16.msra.mxu0 %v858_v49 }
 0x238   :  { %808 = vmatprep.subr.bf16.mxu0 %v1034_v0 }
 0x23b   :  { %809 = vmatpush3.bf16.msra.mxu0 %v859_v50 }
 0x23c   :  { %810 = vmatprep.subr.bf16.mxu0 %v1034_v0 }
 0x23f   :  { %811 = vmatpush3.bf16.msra.mxu0 %v860_v59 }
 0x240   :  { %812 = vmatprep.subr.bf16.mxu0 %v1034_v0 }
 0x243   :  { %813 = vmatpush3.bf16.msra.mxu0 %v861_v60 }
 0x2f9   :  { %v404_v52 = vpop.f32.mrb[4].mxu0 }
 0x2fa   :  { %v405_v53 = vadd.f32 %v667_v51, %v404_v52  ;;  %v776_v54 = vpop.f32.mrb[5].mxu0 }
 0x2fb   :  { %v407_v55 = vpop.f32.mrb[6].mxu0 }
 0x2fc   :  { %v410_v56 = vmax.f32 %v405_v53, 0.0  ;;  %v777_v57 = vpop.f32.mrb[7].mxu0 }
 0x2fe   :  { %v411_v58 = vpack.c.bf16 %v410_v56, %v410_v56 }
 0x300   :  { %795 = vmatmul.mubr.bf16.vlgmr.msra.gmra.mrb[4].mxu1 %v411_v58 }
 0x3d3   :  { %v517_v62 = vpop.f32.mrb[4].mxu1 }
 0x3d4   :  { %v518_v63 = vadd.f32 %v676_v61, %v517_v62  ;;  %v796_v1 = vpop.f32.mrb[5].mxu1 }
 0x3d5   :  { %v520_v2 = vpop.f32.mrb[6].mxu1 }
 0x3d6   :  { %v523_v3 = vmax.f32 %v518_v63, 0.0  ;;  %v797_v4 = vpop.f32.mrb[7].mxu1 }
 0x3d8   :  { %v524_v5 = vpack.c.bf16 %v523_v3, %v523_v3 }
 0x3da   :  { %815 = vmatmul.mubr.bf16.vlgmr.msra.gmra.mrb[8].mxu0 %v524_v5 }
 0x4ad   :  { %v630_v0 = vpop.f32.mrb[8].mxu0 }
 0x4ae   :  { %v631_v7 = vadd.f32 %v685_v6, %v630_v0  ;;  %v816_v8 = vpop.f32.mrb[9].mxu0 }
 0x4af   :  { %v633_v9 = vpop.f32.mrb[10].mxu0 }
 0x4b0   :  { %636 = vst [vmem:[#allocation13] sm:$0xff] %v631_v7  ;;  %v817_v10 = vpop.f32.mrb[11].mxu0 }
 0x4b1   :  { %1005 = shalt.err (!%p1002_p10)
}
 0x4b2   :  { %s1006_s10 = scalar_lea.hbm %s1265_s11, 128 }
 0x4b3   :  { %p1007_p11 = scmp.ne.s32.totalorder %s1265_s11, %s1006_s10  ;;  %p1010_p12 = scmp.lt.u32.totalorder %s1006_s10, %s1265_s11 }
 0x4b5   :  { %p1012_p13 = pnand %p1010_p12, %p1007_p11 }
 0x4b7   :  { %1015 = shalt.err (!%p1012_p13)
}
 0x4b8   :  { %646 = dma.vmem_to_hbm [thread:$0]  %s644_s13, 128, %s1265_s11, [#allocation4]  }
 0x4b9   :  { %1024 = dma.done.wait [#allocation4], 128  }
 0x4ba   :  { %1025 = vsyncadd [#allocation4], 4294967168 }
 0x4bb   :  { %650 = vsyncpa [#allocation3], 1 }
 0x4bc   :  { %651 = vsyncpa [#allocation6], 1 }
 0x4bd   :  { %652 = vsyncpa [#allocation9], 1 }
 0x4be   :  { %653 = vsyncpa [#allocation12], 1 }
 0x4bf   :  { %654 = vsyncpa [#allocation4], 1 }

</bundles_post_ra>
